<compile_context>
chip_gen: v6e
topology: v6e:2x2x1
jax: 0.10.0
libtpu: 0.0.40
codegen_flags: <defaults>
</compile_context>

<pallas_src>
import jax
import jax.numpy as jnp
from jax import lax
from jax.experimental import pallas as pl
from jax.experimental.pallas import tpu as pltpu


def _round_up(a, b):
    return (a + b - 1) // b * b


def _int4_embed_gather_kernel(idx_ref, w_ref, s_ref, b_ref, exp_ref, out_ref):
    """One grid step: dequantize + gather T embedding rows.

    idx_ref : (T, 1)     int32  token ids for this step
    w_ref   : (E, D)     bf16   quantized weights (int4 values, exact in bf16)
    s_ref   : (E, 3*DG)  bf16   per-group scale split into 3 exact bf16 pieces
    b_ref   : (E, 3*DG)  bf16   per-group bias (-zp*scale), split the same way
    exp_ref : (3*DG, D)  bf16   0/1 matrix: row k*DG+g -> lanes of group g
    out_ref : (T, D)     f32
    """
    t, _ = out_ref.shape
    e = w_ref.shape[0]

    # One-hot token->row selector (VPU); 0/1 values are exact in bf16.
    ids = idx_ref[...]                                              # (T, 1) int32
    oh = (ids == lax.broadcasted_iota(jnp.int32, (t, e), 1))        # (T, E) bool
    oh = oh.astype(jnp.bfloat16)

    # Gather the T quantized rows on the MXU: exact (0/1 x small integers).
    w_rows = jnp.dot(oh, w_ref[...], preferred_element_type=jnp.float32)    # (T, D)

    # Gather each row's per-group scale/bias pieces (exact bf16 selections)...
    s_pieces = jnp.dot(oh, s_ref[...], preferred_element_type=jnp.float32)  # (T, 3*DG)
    b_pieces = jnp.dot(oh, b_ref[...], preferred_element_type=jnp.float32)  # (T, 3*DG)
    # ...then expand groups to full lane width D while summing the 3 pieces
    # back into (nearly bit-exact) f32 values, again via 0/1 bf16 matmuls.
    s_full = jnp.dot(s_pieces.astype(jnp.bfloat16), exp_ref[...],
                     preferred_element_type=jnp.float32)                    # (T, D)
    b_full = jnp.dot(b_pieces.astype(jnp.bfloat16), exp_ref[...],
                     preferred_element_type=jnp.float32)                    # (T, D)

    # Dequantized gathered rows: (q - zp) * s  ==  q * s + (-zp * s).
    out_ref[...] = w_rows * s_full + b_full


def _split_bf16(x):
    """Split f32 (E, DG) into 3 bf16 pieces whose sum reconstructs x to ~1 ulp."""
    hi = x.astype(jnp.bfloat16)
    r1 = x - hi.astype(jnp.float32)
    lo = r1.astype(jnp.bfloat16)
    r2 = r1 - lo.astype(jnp.float32)
    lo2 = r2.astype(jnp.bfloat16)
    return jnp.concatenate([hi, lo, lo2], axis=1)                   # (E, 3*DG)


def int4_weight_only_embedding(x, weight, scale, zero_point, group_size=32,
                               tokens_per_step=256):
    """Pallas forward of Int4WeightOnlyEmbedding (output_dtype=float32)."""
    E, D = weight.shape
    assert D % group_size == 0
    DG = D // group_size
    assert scale.shape == (E, DG) and zero_point.shape == (E, DG)

    # Flatten and clamp token ids (see TODO above re OOB behavior).
    idx = jnp.clip(x.reshape(-1).astype(jnp.int32), 0, E - 1)
    N = idx.shape[0]
    T = max(8, min(_round_up(tokens_per_step, 8), _round_up(N, 8)))
    n_blocks = pl.cdiv(N, T)
    N_pad = n_blocks * T
    if N_pad != N:
        idx = jnp.pad(idx, (0, N_pad - N))      # pad with valid row 0; sliced off
    idx2d = idx.reshape(N_pad, 1)

    # VMEM-resident tables (constant-index blocks -> DMA'd once, reused).
    w_bf16 = weight.astype(jnp.bfloat16)                       # int4 values: exact
    s_f32 = scale.astype(jnp.float32)
    bias_f32 = -(zero_point.astype(jnp.float32) * s_f32)       # fold zp into a bias
    s_pieces = _split_bf16(s_f32)                              # (E, 3*DG) bf16
    b_pieces = _split_bf16(bias_f32)                           # (E, 3*DG) bf16
    # 0/1 group->lane expansion matrix: row k*DG + g hits the lanes of group g.
    gidx = jnp.arange(D, dtype=jnp.int32) // group_size        # (D,)
    rows = jnp.arange(3 * DG, dtype=jnp.int32) % DG            # (3*DG,)
    expand = (rows[:, None] == gidx[None, :]).astype(jnp.bfloat16)   # (3*DG, D)

    # VMEM budget for the table-resident design (count every buffer, x2 bufs).
    lane = lambda n: _round_up(n, 128)
    est_vmem = 2 * (T * lane(1) * 4                 # token-id block (lane-padded)
                    + E * lane(D) * 2               # bf16 weight table
                    + 2 * E * lane(3 * DG) * 2      # scale + bias pieces
                    + 3 * DG * lane(D) * 2          # expansion matrix
                    + T * lane(D) * 4)              # f32 output block
    assert est_vmem <= 40 * 1024 * 1024, "table too large for VMEM-resident design"

    grid_spec = pltpu.PrefetchScalarGridSpec(
        num_scalar_prefetch=0,
        grid=(n_blocks,),
        in_specs=[
            pl.BlockSpec((T, 1), lambda i: (i, 0)),          # token ids
            pl.BlockSpec((E, D), lambda i: (0, 0)),          # weight (resident)
            pl.BlockSpec((E, 3 * DG), lambda i: (0, 0)),     # scale pieces (resident)
            pl.BlockSpec((E, 3 * DG), lambda i: (0, 0)),     # bias pieces (resident)
            pl.BlockSpec((3 * DG, D), lambda i: (0, 0)),     # expansion (resident)
        ],
        out_specs=pl.BlockSpec((T, D), lambda i: (i, 0)),
    )

    out = pl.pallas_call(
        _int4_embed_gather_kernel,
        out_shape=jax.ShapeDtypeStruct((N_pad, D), jnp.float32),
        grid_spec=grid_spec,
        compiler_params=pltpu.CompilerParams(
            dimension_semantics=("parallel",),
            vmem_limit_bytes=48 * 1024 * 1024,
        ),
    )(idx2d, w_bf16, s_pieces, b_pieces, expand)

    return out[:N].reshape(x.shape + (D,))


if __name__ == "__main__":
    num_embeddings = 64
    embedding_dim = 256
    group_size = 32
    batch, seq = 2, 8

    key = jax.random.PRNGKey(0)
    k_w, k_s, k_z, k_x = jax.random.split(key, 4)

    # Deterministic synthetic buffers matching the module's registered buffers.
    weight = jax.random.randint(
        k_w, (num_embeddings, embedding_dim), -8, 8).astype(jnp.int8)
    scale = jax.random.uniform(
        k_s, (num_embeddings, embedding_dim // group_size),
        minval=0.01, maxval=0.1).astype(jnp.float32)
    zero_point = jax.random.randint(
        k_z, (num_embeddings, embedding_dim // group_size), -8, 8).astype(jnp.int32)
    x = jax.random.randint(k_x, (batch, seq), 0, num_embeddings).astype(jnp.int32)

    out = int4_weight_only_embedding(x, weight, scale, zero_point, group_size)
    out = jax.block_until_ready(out)

    # Pure-JAX reference: dequantize_affine([1, group_size]) + embedding gather.
    E, D = weight.shape
    DG = D // group_size
    w_dq_ref = (
        (weight.astype(jnp.int32).reshape(E, DG, group_size) - zero_point[:, :, None])
        .astype(jnp.float32) * scale[:, :, None]
    ).reshape(E, D)
    ref = w_dq_ref[x]

    assert out.shape == (batch, seq, embedding_dim), out.shape
    assert out.dtype == jnp.float32
    assert jnp.allclose(out, ref, atol=1e-5, rtol=1e-5), "mismatch vs reference"
    print("KERNEL_OK")
</pallas_src>

<mosaic_0001>
module attributes {stable_mosaic.version = 11 : i64} {
  func.func @_int4_embed_gather_kernel(%arg0: i32, %arg1: memref<16x1xi32, #tpu.memory_space<vmem>>, %arg2: memref<64x256xbf16, #tpu.memory_space<vmem>>, %arg3: memref<64x24xbf16, #tpu.memory_space<vmem>>, %arg4: memref<64x24xbf16, #tpu.memory_space<vmem>>, %arg5: memref<24x256xbf16, #tpu.memory_space<vmem>>, %arg6: memref<16x256xf32, #tpu.memory_space<vmem>>) attributes {dimension_semantics = [#tpu.dimension_semantics<parallel>], iteration_bounds = array<i64: 1>, scalar_prefetch = 0 : i64, scratch_operands = 0 : i64, tpu.core_type = #tpu.core_type<tc>, window_params = [{transform_indices = @transform_0, window_bounds = array<i64: 16, 1>}, {pipeline_mode = #tpu.pipeline_mode<synchronous>, transform_indices = @transform_1, window_bounds = array<i64: 64, 256>}, {pipeline_mode = #tpu.pipeline_mode<synchronous>, transform_indices = @transform_2, window_bounds = array<i64: 64, 24>}, {pipeline_mode = #tpu.pipeline_mode<synchronous>, transform_indices = @transform_3, window_bounds = array<i64: 64, 24>}, {pipeline_mode = #tpu.pipeline_mode<synchronous>, transform_indices = @transform_4, window_bounds = array<i64: 24, 256>}, {transform_indices = @transform_5, window_bounds = array<i64: 16, 256>}]} {
    %c0 = arith.constant 0 : index
    %c0_0 = arith.constant 0 : index
    %0 = vector.load %arg1[%c0, %c0_0] : memref<16x1xi32, #tpu.memory_space<vmem>>, vector<16x1xi32>
    %1 = tpu.iota {dimensions = array<i32: 1>} : vector<16x64xi32>
    %2 = vector.broadcast %0 : vector<16x1xi32> to vector<16x64xi32>
    %3 = arith.cmpi eq, %2, %1 : vector<16x64xi32>
    %4 = arith.extui %3 : vector<16x64xi1> to vector<16x64xi32>
    %5 = arith.sitofp %4 : vector<16x64xi32> to vector<16x64xf32>
    %6 = arith.truncf %5 : vector<16x64xf32> to vector<16x64xbf16>
    %c0_1 = arith.constant 0 : index
    %c0_2 = arith.constant 0 : index
    %7 = vector.load %arg2[%c0_1, %c0_2] : memref<64x256xbf16, #tpu.memory_space<vmem>>, vector<64x256xbf16>
    %cst = arith.constant dense<0.000000e+00> : vector<16x256xf32>
    %8 = tpu.matmul %6, %7, %cst {dimension_numbers = #tpu.dot_dimension_numbers<[1], [0], [0], [1], [0, 0, 1, 1], [], []>} : vector<16x64xbf16>, vector<64x256xbf16>, vector<16x256xf32> -> vector<16x256xf32>
    %c0_3 = arith.constant 0 : index
    %c0_4 = arith.constant 0 : index
    %9 = vector.load %arg3[%c0_3, %c0_4] : memref<64x24xbf16, #tpu.memory_space<vmem>>, vector<64x24xbf16>
    %cst_5 = arith.constant dense<0.000000e+00> : vector<16x24xf32>
    %10 = tpu.matmul %6, %9, %cst_5 {dimension_numbers = #tpu.dot_dimension_numbers<[1], [0], [0], [1], [0, 0, 1, 1], [], []>} : vector<16x64xbf16>, vector<64x24xbf16>, vector<16x24xf32> -> vector<16x24xf32>
    %c0_6 = arith.constant 0 : index
    %c0_7 = arith.constant 0 : index
    %11 = vector.load %arg4[%c0_6, %c0_7] : memref<64x24xbf16, #tpu.memory_space<vmem>>, vector<64x24xbf16>
    %cst_8 = arith.constant dense<0.000000e+00> : vector<16x24xf32>
    %12 = tpu.matmul %6, %11, %cst_8 {dimension_numbers = #tpu.dot_dimension_numbers<[1], [0], [0], [1], [0, 0, 1, 1], [], []>} : vector<16x64xbf16>, vector<64x24xbf16>, vector<16x24xf32> -> vector<16x24xf32>
    %13 = arith.truncf %10 : vector<16x24xf32> to vector<16x24xbf16>
    %c0_9 = arith.constant 0 : index
    %c0_10 = arith.constant 0 : index
    %14 = vector.load %arg5[%c0_9, %c0_10] : memref<24x256xbf16, #tpu.memory_space<vmem>>, vector<24x256xbf16>
    %cst_11 = arith.constant dense<0.000000e+00> : vector<16x256xf32>
    %15 = tpu.matmul %13, %14, %cst_11 {dimension_numbers = #tpu.dot_dimension_numbers<[1], [0], [0], [1], [0, 0, 1, 1], [], []>} : vector<16x24xbf16>, vector<24x256xbf16>, vector<16x256xf32> -> vector<16x256xf32>
    %16 = arith.truncf %12 : vector<16x24xf32> to vector<16x24xbf16>
    %c0_12 = arith.constant 0 : index
    %c0_13 = arith.constant 0 : index
    %17 = vector.load %arg5[%c0_12, %c0_13] : memref<24x256xbf16, #tpu.memory_space<vmem>>, vector<24x256xbf16>
    %cst_14 = arith.constant dense<0.000000e+00> : vector<16x256xf32>
    %18 = tpu.matmul %16, %17, %cst_14 {dimension_numbers = #tpu.dot_dimension_numbers<[1], [0], [0], [1], [0, 0, 1, 1], [], []>} : vector<16x24xbf16>, vector<24x256xbf16>, vector<16x256xf32> -> vector<16x256xf32>
    %19 = arith.mulf %8, %15 : vector<16x256xf32>
    %20 = arith.addf %19, %18 : vector<16x256xf32>
    %c0_15 = arith.constant 0 : index
    %c0_16 = arith.constant 0 : index
    %21 = vector.load %arg6[%c0_15, %c0_16] : memref<16x256xf32, #tpu.memory_space<vmem>>, vector<16x256xf32>
    tpu.vector_store %arg6[%c0_15, %c0_16], %20 {strides = array<i32>} : memref<16x256xf32, #tpu.memory_space<vmem>>, vector<16x256xf32>,
    return
  }
  func.func @transform_0(%arg0: i32) -> (i32, i32) {
    %c0_i32 = arith.constant 0 : i32
    %c0_i32_0 = arith.constant 0 : i32
    return %arg0, %c0_i32 : i32, i32
  }
  func.func @transform_1(%arg0: i32) -> (i32, i32) {
    %c0_i32 = arith.constant 0 : i32
    %c0_i32_0 = arith.constant 0 : i32
    %c0_i32_1 = arith.constant 0 : i32
    return %c0_i32, %c0_i32_0 : i32, i32
  }
  func.func @transform_2(%arg0: i32) -> (i32, i32) {
    %c0_i32 = arith.constant 0 : i32
    %c0_i32_0 = arith.constant 0 : i32
    %c0_i32_1 = arith.constant 0 : i32
    return %c0_i32, %c0_i32_0 : i32, i32
  }
  func.func @transform_3(%arg0: i32) -> (i32, i32) {
    %c0_i32 = arith.constant 0 : i32
    %c0_i32_0 = arith.constant 0 : i32
    %c0_i32_1 = arith.constant 0 : i32
    return %c0_i32, %c0_i32_0 : i32, i32
  }
  func.func @transform_4(%arg0: i32) -> (i32, i32) {
    %c0_i32 = arith.constant 0 : i32
    %c0_i32_0 = arith.constant 0 : i32
    %c0_i32_1 = arith.constant 0 : i32
    return %c0_i32, %c0_i32_0 : i32, i32
  }
  func.func @transform_5(%arg0: i32) -> (i32, i32) {
    %c0_i32 = arith.constant 0 : i32
    %c0_i32_0 = arith.constant 0 : i32
    return %arg0, %c0_i32 : i32, i32
  }
}

</mosaic_0001>

<bundles_post_ra>
// kernel: tpu_custom_call.1
= control target key start
LH: loop header
LB: loop body
LE: loop exit
PB: predicated region body
PF: predicated region fallthrough
CT: control target
= control target key end

     0   :  { %v545_v1 = vmov 0   ;;  %v546_v5 = vmov 0.0   ;;  %vm547_vm0 = vmmov 0   ;;  %s661_s0 = inlined_call_operand.vmem [shape: s32[16,1], index: 0, kind: input, shape index: {}]   ;;  %s662_s1 = inlined_call_operand.vmem [shape: bf16[64,256], index: 1, kind: input, shape index: {}]   ;;  %s663_s2 = inlined_call_operand.vmem [shape: bf16[64,24], index: 2, kind: input, shape index: {}]   ;;  %s664_s3 = inlined_call_operand.vmem [shape: bf16[64,24], index: 3, kind: input, shape index: {}]   ;;  %s665_s4 = inlined_call_operand.vmem [shape: bf16[24,256], index: 4, kind: input, shape index: {}]   ;;  %s666_s5 = inlined_call_operand.hbm [shape: f32[16,256], index: 5, kind: output, shape index: {}]  }
   0x1   :  { %v22_v0 = vld [vmem:[%s661_s0] sm:$0xff]  ;;  %497 = vset.pattern.permute.xlu0 %v545_v1  ;;  %v23_v2 = vld [vmem:[%s661_s0 + $0x8] sm:$0xff]  ;;  %v498_v3 = vld [vmem:[%s662_s1 + $0x34] ss:$8 sps:$4 sm:$0xff]   ;;  %467 = vmatprep.subr.bf16.mxu1 %v546_v5 }
   0x2   :  { %v500_v4 = vld [vmem:[%s662_s1 + $0x30] ss:$8 sps:$4 sm:$0xff]   ;;  %27 = vperm.xlu0 %497, %v22_v0   ;;  %123 = vmatprep.mubr.bf16.mxu0 %v545_v1  ;;  %v502_v7 = vld [vmem:[%s662_s1 + $0x24] ss:$8 sps:$4 sm:$0xff]   ;;  %v504_v8 = vld [vmem:[%s662_s1 + $0x20] ss:$8 sps:$4 sm:$0xff]  }
   0x3   :  { %v501_v6 = vld [vmem:[%s663_s2 + $0x18] sm:$0xff]   ;;  %99 = vmatprep.subr.bf16.mxu0 %v498_v3  ;;  %v505_v9 = vld [vmem:[%s663_s2 + $0x10] sm:$0xff]   ;;  %475 = vmatprep.mubr.msk.bf16.mxu1 %vm547_vm0, %v546_v5  ;;  %v509_v12 = vld [vmem:[%s663_s2 + $0x8] sm:$0xff]  }
   0x4   :  { %100 = vmatpush1.bf16.msra.mxu0 %v500_v4  ;;  %468 = vmatpush3.bf16.msra.mxu1 %v501_v6  ;;  %v506_v10 = vld [vmem:[%s662_s1 + $0x14] ss:$8 sps:$4 sm:$0xff]   ;;  %v508_v11 = vld [vmem:[%s662_s1 + $0x10] ss:$8 sps:$4 sm:$0xff]   ;;  %v510_v13 = vld [vmem:[%s662_s1 + $0x4] ss:$8 sps:$4 sm:$0xff]  }
   0x5   :  { %101 = vmatprep.subr.bf16.mxu0 %v502_v7  ;;  %469 = vmatprep.subr.bf16.mxu1 %v546_v5  ;;  %v512_v14 = vld [vmem:[%s662_s1] ss:$8 sps:$4 sm:$0xff]  }
   0x6   :  { %30 = vperm.xlu0 %497, %v23_v2   ;;  %v513_v15 = vld [vmem:[%s663_s2] sm:$0xff]  }
   0x8   :  { %102 = vmatpush1.bf16.msra.mxu0 %v504_v8  ;;  %470 = vmatpush3.bf16.msra.mxu1 %v505_v9 }
   0x9   :  { %103 = vmatprep.subr.bf16.mxu0 %v506_v10  ;;  %471 = vmatprep.subr.bf16.mxu1 %v546_v5 }
   0xc   :  { %104 = vmatpush1.bf16.msra.mxu0 %v508_v11  ;;  %472 = vmatpush3.bf16.msra.mxu1 %v509_v12 }
   0xd   :  { %105 = vmatprep.subr.bf16.mxu0 %v510_v13  ;;  %473 = vmatprep.subr.bf16.mxu1 %v546_v5 }
   0xe   :  { %10 = vsyncpa [#allocation3], 0  ;;  %v283_v16 = vld [vmem:[%s665_s4 + $0x10] sm:$0xff]  ;;  %vm303_vm1 = vcmask 1043456   ;;  %v24_v18 = vlaneseq  ;;  %vm87_vm4 = vcmask 523264   ;;  %v514_v24 = vld [vmem:[%s664_s3 + $0x18] sm:$0xff]  }
   0xf   :  { %v452_v17 = vcombine.high %v283_v16, %v283_v16  ;;  %v515_v26 = vld [vmem:[%s664_s3 + $0x10] sm:$0xff]   ;;  %v516_v27 = vld [vmem:[%s664_s3 + $0x8] sm:$0xff]   ;;  %v517_v28 = vld [vmem:[%s664_s3] sm:$0xff]   ;;  %v451_v29 = vcombine.low %v283_v16, %v283_v16  ;;  %vm299_vm5 = vcmask 195584   ;;  %s548_s3 = smov [#allocation2]  }
  0x10   :  { %106 = vmatpush1.bf16.msra.mxu0 %v512_v14  ;;  %474 = vmatpush3.bf16.msra.mxu1 %v513_v15  ;;  %v25_v19 = vand.u32 127, %v24_v18  ;;  %v520_v31 = vld [vmem:[%s665_s4] ss:$8 sps:$4 sm:$0xff]   ;;  %v522_v32 = vld [vmem:[%s665_s4 + $0x4] ss:$8 sps:$4 sm:$0xff]   ;;  %s417_s4 = sshll.u32 %s548_s3, 4  ;;  %s418_s4 = int_to_ptr.vmem [resolvable:$true] %s417_s4 }
  0x11   :  { %479 = vmatprep.subr.bf16.mxu0 %v546_v5  ;;  %453 = vmatprep.subr.msk.bf16.mxu1 %vm303_vm1, %v452_v17  ;;  %v305_v30 = vsel %vm303_vm1, %v451_v29, 0  ;;  %s523_s6 = scalar_lea.vmem %s418_s4, 512  ;;  %p528_p1 = scmp.lt.s32.totalorder %s418_s4, %s418_s4 }
  0x12   :  { %p524_p0 = scmp.ne.s32.totalorder %s418_s4, %s523_s6  ;;  %p529_p2 = scmp.lt.s32.totalorder %s523_s6, %s523_s6 }
  0x14   :  { %p530_p3 = por %p529_p2, %p528_p1 }
  0x16   :  { %p531_p4 = pnand %p530_p3, %p524_p0 }
  0x7d   :  { %v28_v20 = vpop.permute.xlu0 %27 }
  0x7e   :  { %vm32_vm2 = vcmp.eq.s32.totalorder %v28_v20, %v25_v19 }
  0x7f   :  { %v428_v22 = vsel %vm32_vm2, 1.0, %v546_v5 }
  0x81   :  { %v31_v21 = vpop.permute.xlu0 %30 }
  0x82   :  { %vm33_vm3 = vcmp.eq.s32.totalorder %v31_v21, %v25_v19 }
  0x83   :  { %v429_v23 = vsel %vm33_vm3, 1.0, %v546_v5 }
  0x84   :  { %v38_v25 = vpack.c.bf16 %v429_v23, %v428_v22 }
  0x86   :  { %438 = vmatmul.mubr.msk.bf16.vlgmr.msra.gmra.mxu0 %vm87_vm4, %v38_v25  ;;  %476 = vmatmul.mubr.msk.bf16.vlgmr.msra.gmra.mxu1 %vm87_vm4, %v38_v25 }
  0x87   :  { %480 = vmatpush3.bf16.msra.mxu0 %v514_v24  ;;  %487 = vmatprep.mubr.msk.bf16.mxu0 %vm547_vm0, %v546_v5 }
  0x88   :  { %481 = vmatprep.subr.bf16.mxu0 %v546_v5  ;;  %342 = vmatprep.mubr.bf16.mxu1 %v545_v1 }
  0x89   :  { %323 = vmatpush1.bf16.msra.mxu1 %v305_v30 }
  0x8a   :  { %324 = vmatprep.subr.bf16.mxu1 %v522_v32 }
  0x8b   :  { %482 = vmatpush3.bf16.msra.mxu0 %v515_v26 }
  0x8c   :  { %483 = vmatprep.subr.bf16.mxu0 %v546_v5 }
  0x8d   :  { %325 = vmatpush1.bf16.msra.mxu1 %v520_v31 }
  0x8e   :  { %455 = vmatprep.subr.msk.bf16.mxu1 %vm303_vm1, %v452_v17 }
  0x8f   :  { %484 = vmatpush3.bf16.msra.mxu0 %v516_v27 }
  0x90   :  { %485 = vmatprep.subr.bf16.mxu0 %v546_v5 }
  0x93   :  { %486 = vmatpush3.bf16.msra.mxu0 %v517_v28 }
  0x96   :  { %488 = vmatmul.mubr.msk.bf16.vlgmr.msra.gmra.mxu0 %vm87_vm4, %v38_v25 }
 0x146   :  { %v200_v33 = vpop.f32.mrf.mxu1  ;;  %v125_v34 = vpop.f32.mrf.mxu0 }
 0x148   :  { %v477_v35 = vpop.f32.mrf.mxu1  ;;  %v127_v38 = vpop.f32.mrf.mxu0 }
 0x14a   :  { %v203_v36 = vpop.f32.mrf.mxu1  ;;  %v129_v40 = vpop.f32.mrf.mxu0 }
 0x14b   :  { %v280_v37 = vpack.c.bf16 %v203_v36, %v200_v33 }
 0x14c   :  { %v478_v39 = vpop.f32.mrf.mxu1  ;;  %v131_v41 = vpop.f32.mrf.mxu0 }
 0x14d   :  { %454 = vmatmul.mubr.msk.bf16.vlgmr.msra.gmra.mxu1 %vm299_vm5, %v280_v37 }
 0x14e   :  { %370 = vmatpush1.bf16.msra.mxu1 %v305_v30  ;;  %389 = vmatprep.mubr.bf16.mxu1 %v545_v1 }
 0x14f   :  { %371 = vmatprep.subr.bf16.mxu1 %v522_v32 }
 0x152   :  { %372 = vmatpush1.bf16.msra.mxu1 %v520_v31 }
 0x156   :  { %v273_v42 = vpop.f32.mrf.mxu0 }
 0x158   :  { %v489_v43 = vpop.f32.mrf.mxu0 }
 0x15a   :  { %v276_v44 = vpop.f32.mrf.mxu0 }
 0x15b   :  { %v353_v45 = vpack.c.bf16 %v276_v44, %v273_v42 }
 0x15c   :  { %v490_v46 = vpop.f32.mrf.mxu0 }
 0x15d   :  { %456 = vmatmul.mubr.msk.bf16.vlgmr.msra.gmra.mxu1 %vm299_vm5, %v353_v45 }
 0x20d   :  { %v344_v47 = vpop.f32.mrf.mxu1 }
 0x20e   :  { %v400_v51 = vmul.f32 %v344_v47, %v125_v34 }
 0x20f   :  { %v346_v48 = vpop.f32.mrf.mxu1 }
 0x210   :  { %v401_v53 = vmul.f32 %v346_v48, %v127_v38 }
 0x211   :  { %v348_v49 = vpop.f32.mrf.mxu1 }
 0x212   :  { %v402_v56 = vmul.f32 %v348_v49, %v129_v40 }
 0x213   :  { %v350_v50 = vpop.f32.mrf.mxu1 }
 0x214   :  { %v403_v59 = vmul.f32 %v350_v50, %v131_v41 }
 0x21d   :  { %v391_v52 = vpop.f32.mrf.mxu1 }
 0x21e   :  { %v404_v54 = vadd.f32 %v400_v51, %v391_v52 }
 0x21f   :  { %v393_v55 = vpop.f32.mrf.mxu1 }
 0x220   :  { %408 = vst [vmem:[#allocation2] sm:$0xff] %v404_v54  ;;  %v405_v57 = vadd.f32 %v401_v53, %v393_v55 }
 0x221   :  { %v395_v58 = vpop.f32.mrf.mxu1 }
 0x222   :  { %409 = vst [vmem:[#allocation2 + $0x8] sm:$0xff] %v405_v57  ;;  %v406_v60 = vadd.f32 %v402_v56, %v395_v58 }
 0x223   :  { %v397_v61 = vpop.f32.mrf.mxu1 }
 0x224   :  { %410 = vst [vmem:[#allocation2 + $0x10] sm:$0xff] %v406_v60  ;;  %v407_v62 = vadd.f32 %v403_v59, %v397_v61 }
 0x226   :  { %411 = vst [vmem:[#allocation2 + $0x18] sm:$0xff] %v407_v62 }
 0x227   :  { %534 = shalt.err (!%p531_p4)
}
 0x228   :  { %s549_s7 = smov 256   ;;  %s550_s8 = smov 16  }
 0x229   :  { %423 = dma.vmem_to_hbm [thread:$0]  %s418_s4, 512, %s666_s5, [#allocation3], %s549_s7, %s549_s7, %s550_s8  }
 0x22a   :  { %543 = dma.done.wait [#allocation3], 512  }
 0x22b   :  { %544 = vsyncadd [#allocation3], 4294966784 }
 0x22c   :  { %427 = vsyncpa [#allocation3], 1 }

</bundles_post_ra>
